<compile_context>
chip_gen: v6e
topology: v6e:2x2x1
jax: 0.10.0
libtpu: 0.0.40
codegen_flags: <defaults>
</compile_context>

<pallas_src>
import functools

import jax
import jax.numpy as jnp
from jax.experimental import pallas as pl
from jax.experimental.pallas import tpu as pltpu


def _round_up(x, m):
    return ((x + m - 1) // m) * m


def _pick_row_tile(n, max_rows=512):
    """Row tile over N = B*T. Full N when small; a multiple-of-8 divisor when
    N grows so blocked specs stay layout-legal and both v7x TCs get work."""
    if n <= max_rows:
        return n
    for t in (512, 256, 128, 64, 32, 16, 8):
        if n % t == 0:
            return t
    return n


# ----------------------------------------------------------------------------
# Single fused forward kernel (one row-tile of N per grid step).
# ----------------------------------------------------------------------------
def _fused_forward_kernel(x_ref, projw_ref, mamba_in_ref, mamba_out_ref,
                          meas_ref, fc1_ref, fc2_ref, o_ref,
                          *, num_layers, embed_dim, d_pad, cell_dim):
    f32 = jnp.float32
    mxu = jnp.bfloat16          # MXU operands bf16, accumulation f32
    E = embed_dim

    def dot_b(a, w):
        return jnp.dot(a.astype(mxu), w.astype(mxu), preferred_element_type=f32)

    # ---- fused modality projections (block-diag weight, bias row) + ReLU ----
    x = x_ref[...]                                               # (Nt, d_pad)
    rep3 = dot_b(x, projw_ref[:d_pad, :]) + projw_ref[d_pad:d_pad + 1, :]
    rep3 = jnp.maximum(rep3, 0.0)                                # (Nt, 3E)

    # ---- softmax-of-norm modal weights + fused density-matrix DIAGONAL ------
    # diag(|v><v|.real) == amp^2 (phase cancels exactly), diag(.imag) == 0, so
    # neither the beats/phase projection nor the (Nt,E,E) outers are computed.
    sq3 = rep3 * rep3
    sq_m = [sq3[:, i * E:(i + 1) * E] for i in range(3)]         # per-modality rep^2
    nrm2 = [jnp.sum(s, axis=-1, keepdims=True) for s in sq_m]    # (Nt, 1)
    nrm = [jnp.sqrt(n2) for n2 in nrm2]                          # L2 norms (softmax logits)
    mx = jnp.maximum(jnp.maximum(nrm[0], nrm[1]), nrm[2])
    ew = [jnp.exp(n - mx) for n in nrm]
    inv_den = pl.reciprocal(ew[0] + ew[1] + ew[2], approx=True)
    vr = None
    for s, n2, e in zip(sq_m, nrm2, ew):
        # F.normalize(rep)^2 == rep^2 / max(||rep||, 1e-12)^2
        scale = (e * inv_den) * pl.reciprocal(jnp.maximum(n2, 1e-24), approx=True)
        c = scale * s
        vr = c if vr is None else vr + c                         # (Nt, E)

    # ---- simplified Mamba stack ----------------------------------------------
    # TODO(synk): the bimamba-v2 MambaBlock (causal conv1d + selective scan) has
    # no clean single-timestep Pallas equivalent; with seq_len == 1 only the
    # gated in/out projections are modelled.  The imaginary branch is provably
    # dead at the output: Tr(h_i h_i^T * P_imag) == 0 (symmetric x antisymmetric),
    # so it is never computed.
    h = vr
    for l in range(num_layers):
        w_in = mamba_in_ref[l]                                   # (E+1, 4E) = [wx|wz ; bx|bz]
        xz = dot_b(h, w_in[:E, :]) + w_in[E:E + 1, :]
        xg, zg = xz[:, :2 * E], xz[:, 2 * E:]
        y = jax.nn.silu(xg) * jax.nn.silu(zg)
        w_out = mamba_out_ref[l]                                 # (2E+1, E) = [wo ; bo]
        h = dot_b(y, w_out[:2 * E, :]) + w_out[2 * E:2 * E + 1, :]

    # ---- QMeasurement: Tr(h h^T (v_r v_r^T + v_i v_i^T)) = (h.v_r)^2+(h.v_i)^2
    ab = dot_b(h, meas_ref[...])                                 # (Nt, 2E) = [h Vr^T | h Vi^T]
    a, b = ab[:, :E], ab[:, E:]
    probs = a * a + b * b

    # ---- SimpleNet head: Dropout(id) -> Linear -> ReLU -> Dropout(id) -> Linear -> Tanh
    h1 = dot_b(probs, fc1_ref[:E, :]) + fc1_ref[E:E + 1, :]
    h1 = jnp.maximum(h1, 0.0)
    logits = jnp.tanh(dot_b(h1, fc2_ref[:cell_dim, :]) + fc2_ref[cell_dim:cell_dim + 1, :])

    # ---- log_softmax over classes --------------------------------------------
    # NOTE: (Nt, 4) output is a masked partial store; pad classes to 128 lanes
    # only if n_classes/N ever grow enough for the store path to matter.
    m = jnp.max(logits, axis=-1, keepdims=True)
    lse = jnp.log(jnp.sum(jnp.exp(logits - m), axis=-1, keepdims=True)) + m
    o_ref[...] = (logits - lse).astype(o_ref.dtype)


# ----------------------------------------------------------------------------
# Parameter init (deterministic, PyTorch-Linear-style uniform), packed for DMA.
# ----------------------------------------------------------------------------
def _uniform(key, shape, fan_in):
    s = 1.0 / float(fan_in) ** 0.5
    return jax.random.uniform(key, shape, jnp.float32, -s, s)


def init_params(key, input_dims, beats_dim, embed_dim, cell_dim, n_classes, num_layers):
    del beats_dim  # beats/phase path is an exact no-op on the consumed diagonal
    E = embed_dim
    d_total = sum(input_dims)
    d_pad = _round_up(d_total, 8)
    keys = jax.random.split(key, 7 + num_layers)

    # modality projections -> one block-diagonal packed weight (d_pad+1, 3E)
    projw = jnp.zeros((d_pad + 1, 3 * E), jnp.float32)
    off = 0
    for i, d in enumerate(input_dims):
        kw, kb = jax.random.split(keys[i])
        projw = projw.at[off:off + d, i * E:(i + 1) * E].set(_uniform(kw, (d, E), d))
        projw = projw.at[d_pad, i * E:(i + 1) * E].set(_uniform(kb, (E,), d))
        off += d
    # keys[3] (beats projection) intentionally unused.

    # QMeasurement: E complex unit vectors, pre-transposed and packed [Vr^T|Vi^T]
    kr, ki = jax.random.split(keys[4])
    vr = jax.random.normal(kr, (E, E), jnp.float32)
    vi = jax.random.normal(ki, (E, E), jnp.float32)
    nrm = jnp.sqrt(jnp.sum(vr * vr + vi * vi, axis=-1, keepdims=True))
    meas = jnp.concatenate([(vr / nrm).T, (vi / nrm).T], axis=1)          # (E, 2E)

    # SimpleNet head, biases folded into the last row
    k5w, k5b = jax.random.split(keys[5])
    k6w, k6b = jax.random.split(keys[6])
    fc1 = jnp.concatenate([_uniform(k5w, (E, cell_dim), E),
                           _uniform(k5b, (1, cell_dim), E)], axis=0)       # (E+1, C)
    fc2 = jnp.concatenate([_uniform(k6w, (cell_dim, n_classes), cell_dim),
                           _uniform(k6b, (1, n_classes), cell_dim)], axis=0)  # (C+1, n)

    # simplified Mamba blocks, packed: [wx|wz ; bx|bz] and [wo ; bo]
    d_inner = 2 * E
    win_l, wout_l = [], []
    for l in range(num_layers):
        k1, k2, k3, k4, k5, k6 = jax.random.split(keys[7 + l], 6)
        wx = _uniform(k1, (E, d_inner), E)
        bx = _uniform(k2, (1, d_inner), E)
        wz = _uniform(k3, (E, d_inner), E)
        bz = _uniform(k4, (1, d_inner), E)
        wo = _uniform(k5, (d_inner, E), d_inner)
        bo = _uniform(k6, (1, E), d_inner)
        win = jnp.concatenate([jnp.concatenate([wx, wz], axis=1),
                               jnp.concatenate([bx, bz], axis=1)], axis=0)  # (E+1, 4E)
        wout = jnp.concatenate([wo, bo], axis=0)                            # (2E+1, E)
        win_l.append(win)
        wout_l.append(wout)

    return {
        "proj_w": projw,                       # (d_pad+1, 3E)
        "mamba_in": jnp.stack(win_l),          # (L, E+1, 4E)
        "mamba_out": jnp.stack(wout_l),        # (L, 2E+1, E)
        "meas_w": meas,                        # (E, 2E)
        "fc1_w": fc1,                          # (E+1, C)
        "fc2_w": fc2,                          # (C+1, n_classes)
    }


# ----------------------------------------------------------------------------
# Full forward pass: one pallas_call; weights resident, activations row-tiled.
# ----------------------------------------------------------------------------
def quantum_superposition_forward(params, text, audio, beats, visual):
    # `beats` kept for interface parity with the PyTorch forward; the phase path
    # is exactly identity on the consumed density-matrix diagonal, so skipped.
    del beats
    B, T = text.shape[:2]
    N = B * T
    f32 = jnp.float32

    d_pad = params["proj_w"].shape[0] - 1
    E = params["meas_w"].shape[0]
    cell_dim = params["fc1_w"].shape[1]
    n_classes = params["fc2_w"].shape[1]
    num_layers = int(params["mamba_in"].shape[0])

    xcat = jnp.concatenate(
        [text.reshape(N, -1), audio.reshape(N, -1), visual.reshape(N, -1)],
        axis=-1).astype(f32)
    if d_pad > xcat.shape[1]:
        xcat = jnp.pad(xcat, ((0, 0), (0, d_pad - xcat.shape[1])))

    row_tile = _pick_row_tile(N)
    grid = (N // row_tile,)

    def full_spec(arr):
        zeros = (0,) * arr.ndim
        return pl.BlockSpec(arr.shape, lambda i: zeros)

    in_specs = [
        pl.BlockSpec((row_tile, d_pad), lambda i: (i, 0)),     # activations stream
        full_spec(params["proj_w"]),
        full_spec(params["mamba_in"]),
        full_spec(params["mamba_out"]),
        full_spec(params["meas_w"]),
        full_spec(params["fc1_w"]),
        full_spec(params["fc2_w"]),
    ]
    out_spec = pl.BlockSpec((row_tile, n_classes), lambda i: (i, 0))

    logp = pl.pallas_call(
        functools.partial(_fused_forward_kernel,
                          num_layers=num_layers, embed_dim=E,
                          d_pad=d_pad, cell_dim=cell_dim),
        out_shape=jax.ShapeDtypeStruct((N, n_classes), f32),
        grid_spec=pltpu.PrefetchScalarGridSpec(
            num_scalar_prefetch=0,
            grid=grid,
            in_specs=in_specs,
            out_specs=out_spec,
        ),
        compiler_params=pltpu.CompilerParams(
            dimension_semantics=("parallel",),
        ),
    )(xcat, params["proj_w"], params["mamba_in"], params["mamba_out"],
      params["meas_w"], params["fc1_w"], params["fc2_w"])

    return logp.reshape(B, T, n_classes)


if __name__ == "__main__":
    B, T = 2, 8                      # batch, time_stamps
    input_dims = (20, 10, 15)        # text / audio / visual feature dims
    beats_dim = 768
    embed_dim = 32
    output_cell_dim = 16
    n_classes = 4
    num_layers = 1

    key = jax.random.PRNGKey(0)
    k_in, k_par = jax.random.split(key)
    kt, ka, kb, kv = jax.random.split(k_in, 4)
    text = jax.random.normal(kt, (B, T, input_dims[0]), jnp.float32)
    audio = jax.random.normal(ka, (B, T, input_dims[1]), jnp.float32)
    beats = jax.random.normal(kb, (B, T, beats_dim), jnp.float32)
    visual = jax.random.normal(kv, (B, T, input_dims[2]), jnp.float32)

    params = init_params(k_par, input_dims, beats_dim, embed_dim,
                         output_cell_dim, n_classes, num_layers)

    fwd = jax.jit(quantum_superposition_forward)
    out = fwd(params, text, audio, beats, visual)
    out = jax.block_until_ready(out)

    assert out.shape == (B, T, n_classes), out.shape
    assert bool(jnp.all(jnp.isfinite(out)))
    # rows are log-probabilities
    assert bool(jnp.allclose(jnp.exp(out).sum(-1), 1.0, atol=1e-3))
    print("KERNEL_OK")
</pallas_src>

<mosaic_0001>
module attributes {stable_mosaic.version = 11 : i64} {
  func.func @_fused_forward_kernel(%arg0: i32, %arg1: memref<16x48xf32, #tpu.memory_space<vmem>>, %arg2: memref<49x96xf32, #tpu.memory_space<vmem>>, %arg3: memref<1x33x128xf32, #tpu.memory_space<vmem>>, %arg4: memref<1x65x32xf32, #tpu.memory_space<vmem>>, %arg5: memref<32x64xf32, #tpu.memory_space<vmem>>, %arg6: memref<33x16xf32, #tpu.memory_space<vmem>>, %arg7: memref<17x4xf32, #tpu.memory_space<vmem>>, %arg8: memref<16x4xf32, #tpu.memory_space<vmem>>) attributes {dimension_semantics = [#tpu.dimension_semantics<parallel>], iteration_bounds = array<i64: 1>, scalar_prefetch = 0 : i64, scratch_operands = 0 : i64, tpu.core_type = #tpu.core_type<tc>, window_params = [{transform_indices = @transform_0, window_bounds = array<i64: 16, 48>}, {pipeline_mode = #tpu.pipeline_mode<synchronous>, transform_indices = @transform_1, window_bounds = array<i64: 49, 96>}, {pipeline_mode = #tpu.pipeline_mode<synchronous>, transform_indices = @transform_2, window_bounds = array<i64: 1, 33, 128>}, {pipeline_mode = #tpu.pipeline_mode<synchronous>, transform_indices = @transform_3, window_bounds = array<i64: 1, 65, 32>}, {pipeline_mode = #tpu.pipeline_mode<synchronous>, transform_indices = @transform_4, window_bounds = array<i64: 32, 64>}, {pipeline_mode = #tpu.pipeline_mode<synchronous>, transform_indices = @transform_5, window_bounds = array<i64: 33, 16>}, {pipeline_mode = #tpu.pipeline_mode<synchronous>, transform_indices = @transform_6, window_bounds = array<i64: 17, 4>}, {transform_indices = @transform_7, window_bounds = array<i64: 16, 4>}]} {
    %c0 = arith.constant 0 : index
    %c0_0 = arith.constant 0 : index
    %0 = vector.load %arg1[%c0, %c0_0] : memref<16x48xf32, #tpu.memory_space<vmem>>, vector<16x48xf32>
    %c0_1 = arith.constant 0 : index
    %c0_2 = arith.constant 0 : index
    %1 = vector.load %arg2[%c0_1, %c0_2] : memref<49x96xf32, #tpu.memory_space<vmem>>, vector<48x96xf32>
    %2 = arith.truncf %0 : vector<16x48xf32> to vector<16x48xbf16>
    %3 = arith.truncf %1 : vector<48x96xf32> to vector<48x96xbf16>
    %cst = arith.constant dense<0.000000e+00> : vector<16x96xf32>
    %4 = tpu.matmul %2, %3, %cst {dimension_numbers = #tpu.dot_dimension_numbers<[1], [0], [0], [1], [0, 0, 1, 1], [], []>} : vector<16x48xbf16>, vector<48x96xbf16>, vector<16x96xf32> -> vector<16x96xf32>
    %c48 = arith.constant 48 : index
    %c0_3 = arith.constant 0 : index
    %5 = vector.load %arg2[%c48, %c0_3] : memref<49x96xf32, #tpu.memory_space<vmem>>, vector<1x96xf32>
    %6 = vector.broadcast %5 : vector<1x96xf32> to vector<16x96xf32>
    %7 = arith.addf %4, %6 : vector<16x96xf32>
    %cst_4 = arith.constant 0.000000e+00 : f32
    %8 = vector.broadcast %cst_4 : f32 to vector<16x96xf32>
    %9 = arith.maximumf %7, %8 : vector<16x96xf32>
    %10 = arith.mulf %9, %9 : vector<16x96xf32>
    %11 = vector.extract_strided_slice %10 {offsets = [0, 0], sizes = [16, 32], strides = [1, 1]} : vector<16x96xf32> to vector<16x32xf32>
    %12 = vector.extract_strided_slice %10 {offsets = [0, 32], sizes = [16, 32], strides = [1, 1]} : vector<16x96xf32> to vector<16x32xf32>
    %13 = vector.extract_strided_slice %10 {offsets = [0, 64], sizes = [16, 32], strides = [1, 1]} : vector<16x96xf32> to vector<16x32xf32>
    %cst_5 = arith.constant dense<0.000000e+00> : vector<16xf32>
    %14 = vector.multi_reduction <add>, %11, %cst_5 [1] : vector<16x32xf32> to vector<16xf32>
    %15 = vector.shape_cast %14 : vector<16xf32> to vector<16x1xf32>
    %cst_6 = arith.constant dense<0.000000e+00> : vector<16xf32>
    %16 = vector.multi_reduction <add>, %12, %cst_6 [1] : vector<16x32xf32> to vector<16xf32>
    %17 = vector.shape_cast %16 : vector<16xf32> to vector<16x1xf32>
    %cst_7 = arith.constant dense<0.000000e+00> : vector<16xf32>
    %18 = vector.multi_reduction <add>, %13, %cst_7 [1] : vector<16x32xf32> to vector<16xf32>
    %19 = vector.shape_cast %18 : vector<16xf32> to vector<16x1xf32>
    %20 = math.sqrt %15 : vector<16x1xf32>
    %21 = math.sqrt %17 : vector<16x1xf32>
    %22 = math.sqrt %19 : vector<16x1xf32>
    %23 = arith.maximumf %20, %21 : vector<16x1xf32>
    %24 = arith.maximumf %23, %22 : vector<16x1xf32>
    %25 = arith.subf %20, %24 : vector<16x1xf32>
    %26 = math.exp %25 : vector<16x1xf32>
    %27 = arith.subf %21, %24 : vector<16x1xf32>
    %28 = math.exp %27 : vector<16x1xf32>
    %29 = arith.subf %22, %24 : vector<16x1xf32>
    %30 = math.exp %29 : vector<16x1xf32>
    %31 = arith.addf %26, %28 : vector<16x1xf32>
    %32 = arith.addf %31, %30 : vector<16x1xf32>
    %33 = tpu.reciprocal %32 {approx = true} : vector<16x1xf32> -> vector<16x1xf32>
    %34 = arith.mulf %26, %33 : vector<16x1xf32>
    %cst_8 = arith.constant 1.000000e-24 : f32
    %35 = vector.broadcast %cst_8 : f32 to vector<16x1xf32>
    %36 = arith.maximumf %15, %35 : vector<16x1xf32>
    %37 = tpu.reciprocal %36 {approx = true} : vector<16x1xf32> -> vector<16x1xf32>
    %38 = arith.mulf %34, %37 : vector<16x1xf32>
    %39 = vector.broadcast %38 : vector<16x1xf32> to vector<16x32xf32>
    %40 = arith.mulf %39, %11 : vector<16x32xf32>
    %41 = arith.mulf %28, %33 : vector<16x1xf32>
    %cst_9 = arith.constant 1.000000e-24 : f32
    %42 = vector.broadcast %cst_9 : f32 to vector<16x1xf32>
    %43 = arith.maximumf %17, %42 : vector<16x1xf32>
    %44 = tpu.reciprocal %43 {approx = true} : vector<16x1xf32> -> vector<16x1xf32>
    %45 = arith.mulf %41, %44 : vector<16x1xf32>
    %46 = vector.broadcast %45 : vector<16x1xf32> to vector<16x32xf32>
    %47 = arith.mulf %46, %12 : vector<16x32xf32>
    %48 = arith.addf %40, %47 : vector<16x32xf32>
    %49 = arith.mulf %30, %33 : vector<16x1xf32>
    %cst_10 = arith.constant 1.000000e-24 : f32
    %50 = vector.broadcast %cst_10 : f32 to vector<16x1xf32>
    %51 = arith.maximumf %19, %50 : vector<16x1xf32>
    %52 = tpu.reciprocal %51 {approx = true} : vector<16x1xf32> -> vector<16x1xf32>
    %53 = arith.mulf %49, %52 : vector<16x1xf32>
    %54 = vector.broadcast %53 : vector<16x1xf32> to vector<16x32xf32>
    %55 = arith.mulf %54, %13 : vector<16x32xf32>
    %56 = arith.addf %48, %55 : vector<16x32xf32>
    %c0_11 = arith.constant 0 : index
    %c0_12 = arith.constant 0 : index
    %c0_13 = arith.constant 0 : index
    %57 = vector.load %arg3[%c0_11, %c0_12, %c0_13] : memref<1x33x128xf32, #tpu.memory_space<vmem>>, vector<1x33x128xf32>
    %58 = vector.shape_cast %57 : vector<1x33x128xf32> to vector<33x128xf32>
    %59 = vector.extract_strided_slice %58 {offsets = [0, 0], sizes = [32, 128], strides = [1, 1]} : vector<33x128xf32> to vector<32x128xf32>
    %60 = arith.truncf %56 : vector<16x32xf32> to vector<16x32xbf16>
    %61 = arith.truncf %59 : vector<32x128xf32> to vector<32x128xbf16>
    %cst_14 = arith.constant dense<0.000000e+00> : vector<16x128xf32>
    %62 = tpu.matmul %60, %61, %cst_14 {dimension_numbers = #tpu.dot_dimension_numbers<[1], [0], [0], [1], [0, 0, 1, 1], [], []>} : vector<16x32xbf16>, vector<32x128xbf16>, vector<16x128xf32> -> vector<16x128xf32>
    %63 = vector.extract_strided_slice %58 {offsets = [32, 0], sizes = [1, 128], strides = [1, 1]} : vector<33x128xf32> to vector<1x128xf32>
    %64 = vector.broadcast %63 : vector<1x128xf32> to vector<16x128xf32>
    %65 = arith.addf %62, %64 : vector<16x128xf32>
    %66 = vector.extract_strided_slice %65 {offsets = [0, 0], sizes = [16, 64], strides = [1, 1]} : vector<16x128xf32> to vector<16x64xf32>
    %67 = vector.extract_strided_slice %65 {offsets = [0, 64], sizes = [16, 64], strides = [1, 1]} : vector<16x128xf32> to vector<16x64xf32>
    %68 = arith.negf %66 : vector<16x64xf32>
    %69 = math.exp %68 : vector<16x64xf32>
    %cst_15 = arith.constant 1.000000e+00 : f32
    %70 = vector.broadcast %cst_15 : f32 to vector<16x64xf32>
    %71 = arith.addf %70, %69 : vector<16x64xf32>
    %72 = arith.divf %70, %71 : vector<16x64xf32>
    %73 = arith.mulf %66, %72 : vector<16x64xf32>
    %74 = arith.negf %67 : vector<16x64xf32>
    %75 = math.exp %74 : vector<16x64xf32>
    %cst_16 = arith.constant 1.000000e+00 : f32
    %76 = vector.broadcast %cst_16 : f32 to vector<16x64xf32>
    %77 = arith.addf %76, %75 : vector<16x64xf32>
    %78 = arith.divf %76, %77 : vector<16x64xf32>
    %79 = arith.mulf %67, %78 : vector<16x64xf32>
    %80 = arith.mulf %73, %79 : vector<16x64xf32>
    %c0_17 = arith.constant 0 : index
    %c0_18 = arith.constant 0 : index
    %c0_19 = arith.constant 0 : index
    %81 = vector.load %arg4[%c0_17, %c0_18, %c0_19] : memref<1x65x32xf32, #tpu.memory_space<vmem>>, vector<1x65x32xf32>
    %82 = vector.shape_cast %81 : vector<1x65x32xf32> to vector<65x32xf32>
    %83 = vector.extract_strided_slice %82 {offsets = [0, 0], sizes = [64, 32], strides = [1, 1]} : vector<65x32xf32> to vector<64x32xf32>
    %84 = arith.truncf %80 : vector<16x64xf32> to vector<16x64xbf16>
    %85 = arith.truncf %83 : vector<64x32xf32> to vector<64x32xbf16>
    %cst_20 = arith.constant dense<0.000000e+00> : vector<16x32xf32>
    %86 = tpu.matmul %84, %85, %cst_20 {dimension_numbers = #tpu.dot_dimension_numbers<[1], [0], [0], [1], [0, 0, 1, 1], [], []>} : vector<16x64xbf16>, vector<64x32xbf16>, vector<16x32xf32> -> vector<16x32xf32>
    %87 = vector.extract_strided_slice %82 {offsets = [64, 0], sizes = [1, 32], strides = [1, 1]} : vector<65x32xf32> to vector<1x32xf32>
    %88 = vector.broadcast %87 : vector<1x32xf32> to vector<16x32xf32>
    %89 = arith.addf %86, %88 : vector<16x32xf32>
    %c0_21 = arith.constant 0 : index
    %c0_22 = arith.constant 0 : index
    %90 = vector.load %arg5[%c0_21, %c0_22] : memref<32x64xf32, #tpu.memory_space<vmem>>, vector<32x64xf32>
    %91 = arith.truncf %89 : vector<16x32xf32> to vector<16x32xbf16>
    %92 = arith.truncf %90 : vector<32x64xf32> to vector<32x64xbf16>
    %cst_23 = arith.constant dense<0.000000e+00> : vector<16x64xf32>
    %93 = tpu.matmul %91, %92, %cst_23 {dimension_numbers = #tpu.dot_dimension_numbers<[1], [0], [0], [1], [0, 0, 1, 1], [], []>} : vector<16x32xbf16>, vector<32x64xbf16>, vector<16x64xf32> -> vector<16x64xf32>
    %94 = vector.extract_strided_slice %93 {offsets = [0, 0], sizes = [16, 32], strides = [1, 1]} : vector<16x64xf32> to vector<16x32xf32>
    %95 = vector.extract_strided_slice %93 {offsets = [0, 32], sizes = [16, 32], strides = [1, 1]} : vector<16x64xf32> to vector<16x32xf32>
    %96 = arith.mulf %94, %94 : vector<16x32xf32>
    %97 = arith.mulf %95, %95 : vector<16x32xf32>
    %98 = arith.addf %96, %97 : vector<16x32xf32>
    %c0_24 = arith.constant 0 : index
    %c0_25 = arith.constant 0 : index
    %99 = vector.load %arg6[%c0_24, %c0_25] : memref<33x16xf32, #tpu.memory_space<vmem>>, vector<32x16xf32>
    %100 = arith.truncf %98 : vector<16x32xf32> to vector<16x32xbf16>
    %101 = arith.truncf %99 : vector<32x16xf32> to vector<32x16xbf16>
    %cst_26 = arith.constant dense<0.000000e+00> : vector<16x16xf32>
    %102 = tpu.matmul %100, %101, %cst_26 {dimension_numbers = #tpu.dot_dimension_numbers<[1], [0], [0], [1], [0, 0, 1, 1], [], []>} : vector<16x32xbf16>, vector<32x16xbf16>, vector<16x16xf32> -> vector<16x16xf32>
    %c32 = arith.constant 32 : index
    %c0_27 = arith.constant 0 : index
    %103 = vector.load %arg6[%c32, %c0_27] : memref<33x16xf32, #tpu.memory_space<vmem>>, vector<1x16xf32>
    %104 = vector.broadcast %103 : vector<1x16xf32> to vector<16x16xf32>
    %105 = arith.addf %102, %104 : vector<16x16xf32>
    %cst_28 = arith.constant 0.000000e+00 : f32
    %106 = vector.broadcast %cst_28 : f32 to vector<16x16xf32>
    %107 = arith.maximumf %105, %106 : vector<16x16xf32>
    %c0_29 = arith.constant 0 : index
    %c0_30 = arith.constant 0 : index
    %108 = vector.load %arg7[%c0_29, %c0_30] : memref<17x4xf32, #tpu.memory_space<vmem>>, vector<16x4xf32>
    %109 = arith.truncf %107 : vector<16x16xf32> to vector<16x16xbf16>
    %110 = arith.truncf %108 : vector<16x4xf32> to vector<16x4xbf16>
    %cst_31 = arith.constant dense<0.000000e+00> : vector<16x4xf32>
    %111 = tpu.matmul %109, %110, %cst_31 {dimension_numbers = #tpu.dot_dimension_numbers<[1], [0], [0], [1], [0, 0, 1, 1], [], []>} : vector<16x16xbf16>, vector<16x4xbf16>, vector<16x4xf32> -> vector<16x4xf32>
    %c16 = arith.constant 16 : index
    %c0_32 = arith.constant 0 : index
    %112 = vector.load %arg7[%c16, %c0_32] : memref<17x4xf32, #tpu.memory_space<vmem>>, vector<1x4xf32>
    %113 = vector.broadcast %112 : vector<1x4xf32> to vector<16x4xf32>
    %114 = arith.addf %111, %113 : vector<16x4xf32>
    %115 = math.tanh %114 : vector<16x4xf32>
    %cst_33 = arith.constant dense<0xFF800000> : vector<16xf32>
    %116 = vector.multi_reduction <maximumf>, %115, %cst_33 [1] : vector<16x4xf32> to vector<16xf32>
    %117 = vector.shape_cast %116 : vector<16xf32> to vector<16x1xf32>
    %118 = vector.broadcast %117 : vector<16x1xf32> to vector<16x4xf32>
    %119 = arith.subf %115, %118 : vector<16x4xf32>
    %120 = math.exp %119 : vector<16x4xf32>
    %cst_34 = arith.constant dense<0.000000e+00> : vector<16xf32>
    %121 = vector.multi_reduction <add>, %120, %cst_34 [1] : vector<16x4xf32> to vector<16xf32>
    %122 = vector.shape_cast %121 : vector<16xf32> to vector<16x1xf32>
    %123 = math.log %122 : vector<16x1xf32>
    %124 = arith.addf %123, %117 : vector<16x1xf32>
    %125 = vector.broadcast %124 : vector<16x1xf32> to vector<16x4xf32>
    %126 = arith.subf %115, %125 : vector<16x4xf32>
    %c0_35 = arith.constant 0 : index
    %c0_36 = arith.constant 0 : index
    %127 = vector.load %arg8[%c0_35, %c0_36] : memref<16x4xf32, #tpu.memory_space<vmem>>, vector<16x4xf32>
    tpu.vector_store %arg8[%c0_35, %c0_36], %126 {strides = array<i32>} : memref<16x4xf32, #tpu.memory_space<vmem>>, vector<16x4xf32>,
    return
  }
  func.func @transform_0(%arg0: i32) -> (i32, i32) {
    %c0_i32 = arith.constant 0 : i32
    %c0_i32_0 = arith.constant 0 : i32
    return %arg0, %c0_i32 : i32, i32
  }
  func.func @transform_1(%arg0: i32) -> (i32, i32) {
    %c0_i32 = arith.constant 0 : i32
    %c0_i32_0 = arith.constant 0 : i32
    %c0_i32_1 = arith.constant 0 : i32
    return %c0_i32, %c0_i32_0 : i32, i32
  }
  func.func @transform_2(%arg0: i32) -> (i32, i32, i32) {
    %c0_i32 = arith.constant 0 : i32
    %c0_i32_0 = arith.constant 0 : i32
    %c0_i32_1 = arith.constant 0 : i32
    %c0_i32_2 = arith.constant 0 : i32
    return %c0_i32, %c0_i32_0, %c0_i32_1 : i32, i32, i32
  }
  func.func @transform_3(%arg0: i32) -> (i32, i32, i32) {
    %c0_i32 = arith.constant 0 : i32
    %c0_i32_0 = arith.constant 0 : i32
    %c0_i32_1 = arith.constant 0 : i32
    %c0_i32_2 = arith.constant 0 : i32
    return %c0_i32, %c0_i32_0, %c0_i32_1 : i32, i32, i32
  }
  func.func @transform_4(%arg0: i32) -> (i32, i32) {
    %c0_i32 = arith.constant 0 : i32
    %c0_i32_0 = arith.constant 0 : i32
    %c0_i32_1 = arith.constant 0 : i32
    return %c0_i32, %c0_i32_0 : i32, i32
  }
  func.func @transform_5(%arg0: i32) -> (i32, i32) {
    %c0_i32 = arith.constant 0 : i32
    %c0_i32_0 = arith.constant 0 : i32
    %c0_i32_1 = arith.constant 0 : i32
    return %c0_i32, %c0_i32_0 : i32, i32
  }
  func.func @transform_6(%arg0: i32) -> (i32, i32) {
    %c0_i32 = arith.constant 0 : i32
    %c0_i32_0 = arith.constant 0 : i32
    %c0_i32_1 = arith.constant 0 : i32
    return %c0_i32, %c0_i32_0 : i32, i32
  }
  func.func @transform_7(%arg0: i32) -> (i32, i32) {
    %c0_i32 = arith.constant 0 : i32
    %c0_i32_0 = arith.constant 0 : i32
    return %arg0, %c0_i32 : i32, i32
  }
}

</mosaic_0001>

<bundles_post_ra>
// kernel: quantum_superposition_forward.1
= control target key start
LH: loop header
LB: loop body
LE: loop exit
PB: predicated region body
PF: predicated region fallthrough
CT: control target
= control target key end

     0   :  { %v748_v0 = vmov 0.0   ;;  %vm749_vm0 = vmmov 0   ;;  %vm44_vm1 = vcmask 392192   ;;  %s751_s19 = smov 96   ;;  %vm93_vm2 = vcmask 261120   ;;  %s1026_s1 = inlined_call_operand.vmem [shape: f32[49,96], index: 1, kind: input, shape index: {}]   ;;  %s1027_s0 = inlined_call_operand.vmem [shape: f32[16,48], index: 0, kind: input, shape index: {}]   ;;  %s1028_s2 = inlined_call_operand.vmem [shape: f32[1,33,128], index: 2, kind: input, shape index: {}]   ;;  %s1029_s3 = inlined_call_operand.vmem [shape: f32[1,65,32], index: 3, kind: input, shape index: {}]   ;;  %s1030_s4 = inlined_call_operand.vmem [shape: f32[32,64], index: 4, kind: input, shape index: {}]   ;;  %s1031_s5 = inlined_call_operand.vmem [shape: f32[33,16], index: 5, kind: input, shape index: {}]   ;;  %s1032_s6 = inlined_call_operand.vmem [shape: f32[17,4], index: 6, kind: input, shape index: {}]   ;;  %s1033_s7 = inlined_call_operand.vmem [shape: f32[16,4], index: 7, kind: output, shape index: {}]  }
   0x1   :  { %632 = vmatprep.subr.bf16.mxu0 %v748_v0  ;;  %v33_v1 = vld [vmem:[%s1026_s1 + $0x20] sm:$0xff]  ;;  %v34_v2 = vld [vmem:[%s1026_s1 + $0x28] sm:$0xff]  ;;  %v31_v3 = vld [vmem:[%s1026_s1 + $0x10] sm:$0xff]  ;;  %638 = vmatprep.mubr.msk.bf16.mxu0 %vm749_vm0, %v748_v0  ;;  %vm344_vm15 = vcmask 523264  }
   0x2   :  { %v38_v4 = vpack.c.bf16 %v34_v2, %v33_v1  ;;  %v32_v5 = vld [vmem:[%s1026_s1 + $0x18] sm:$0xff]  ;;  %642 = vmatprep.subr.bf16.mxu1 %v748_v0  ;;  %646 = vmatprep.mubr.msk.bf16.mxu1 %vm749_vm0, %v748_v0  ;;  %v29_v7 = vld [vmem:[%s1026_s1] sm:$0xff]  ;;  %v30_v8 = vld [vmem:[%s1026_s1 + $0x8] sm:$0xff] }
   0x3   :  { %v37_v6 = vpack.c.bf16 %v32_v5, %v31_v3  ;;  %v36_v9 = vpack.c.bf16 %v30_v8, %v29_v7  ;;  %v27_v10 = vld [vmem:[%s1027_s0] sm:$0xff]  ;;  %v28_v11 = vld [vmem:[%s1027_s0 + $0x8] sm:$0xff]  ;;  %v599_v13 = vld [vmem:[%s1026_s1 + $0x30] ss:$0 sm:$0xff]  ;;  %s750_s0 = smov 64  }
   0x4   :  { %633 = vmatpush3.bf16.msra.mxu0 %v38_v4  ;;  %v35_v12 = vpack.c.bf16 %v28_v11, %v27_v10 }
   0x5   :  { %634 = vmatprep.subr.bf16.mxu0 %v748_v0 }
   0x8   :  { %635 = vmatpush3.bf16.msra.mxu0 %v37_v6 }
   0x9   :  { %636 = vmatprep.subr.bf16.mxu0 %v748_v0 }
   0xc   :  { %637 = vmatpush3.bf16.msra.mxu0 %v36_v9 }
   0xd   :  { %662 = vmatprep.subr.bf16.mxu0 %v748_v0 }
   0xf   :  { %639 = vmatmul.mubr.msk.bf16.vlgmr.msra.gmra.mxu0 %vm44_vm1, %v35_v12  ;;  %vm566_vm1 = vcmask 31744  }
  0x10   :  { %666 = vmatprep.mubr.msk.bf16.mxu0 %vm749_vm0, %v748_v0 }
  0xcf   :  { %v82_v14 = vpop.f32.mrf.mxu0 }
  0xd0   :  { %v83_v15 = vadd.f32 %v599_v13, %v82_v14 }
  0xd1   :  { %v640_v16 = vpop.f32.mrf.mxu0 }
  0xd2   :  { %v89_v17 = vmax.f32 %v83_v15, 0.0 }
  0xd3   :  { %v85_v18 = vpop.f32.mrf.mxu0 }
  0xd4   :  { %v830_v19 = vmul.f32 %v89_v17, %v89_v17  ;;  %v86_v20 = vadd.f32 %v599_v13, %v85_v18 }
  0xd5   :  { %v641_v21 = vpop.f32.mrf.mxu0 }
  0xd6   :  { %v90_v22 = vmax.f32 %v86_v20, 0.0  ;;  %114 = vrot.lane.b32.xlu1 %v830_v19, %s750_s0  ;;  %102 = vrot.lane.b32.xlu0 %v830_v19, %s751_s19  ;;  %v94_v24 = vsel %vm93_vm2, %v830_v19, 0.0 }
  0xd8   :  { %v836_v23 = vmul.f32 %v90_v22, %v90_v22 }
  0xda   :  { %116 = vrot.lane.b32.xlu1 %v836_v23, %s750_s0  ;;  %104 = vrot.lane.b32.xlu0 %v836_v23, %s751_s19  ;;  %v97_v25 = vsel %vm93_vm2, %v836_v23, 0.0 }
  0xf9   :  { %95 = vadd.xlane.f32.xlu0 %v94_v24 }
  0xfe   :  { %98 = vadd.xlane.f32.xlu1 %v97_v25 }
 0x148   :  { %v115_v26 = vpop.permute.xlu1 %114  ;;  %v103_v27 = vpop.permute.xlu0 %102 }
 0x149   :  { %v108_v28 = vsel %vm93_vm2, %v103_v27, 0.0  ;;  %v120_v29 = vsel %vm93_vm2, %v115_v26, 0.0 }
 0x14a   :  { %109 = vadd.xlane.f32.xlu0 %v108_v28  ;;  %121 = vadd.xlane.f32.xlu1 %v120_v29 }
 0x14c   :  { %v105_v30 = vpop.permute.xlu0 %104  ;;  %v117_v32 = vpop.permute.xlu1 %116 }
 0x14d   :  { %v111_v31 = vsel %vm93_vm2, %v105_v30, 0.0  ;;  %v123_v33 = vsel %vm93_vm2, %v117_v32, 0.0 }
 0x14e   :  { %112 = vadd.xlane.f32.xlu0 %v111_v31 }
 0x152   :  { %124 = vadd.xlane.f32.xlu0 %v123_v33 }
 0x182   :  { %v850_v34 = vpop.xlane.xlu0 %95 }
 0x183   :  { %688 = vrsqrt.f32 %v850_v34  ;;  %vm128_vm3 = vcmp.eq.f32.partialorder %v850_v34, inf  ;;  %vm130_vm4 = vcmp.eq.f32.partialorder %v850_v34, 0.0  ;;  %v131_v47 = vand.u32 2147483648, %v850_v34 }
 0x187   :  { %v853_v35 = vpop.xlane.xlu1 %98 }
 0x188   :  { %690 = vrsqrt.f32 %v853_v35  ;;  %vm135_vm9 = vcmp.eq.f32.partialorder %v853_v35, inf  ;;  %vm137_vm11 = vcmp.eq.f32.partialorder %v853_v35, 0.0  ;;  %v138_v1 = vand.u32 2147483648, %v853_v35 }
 0x190   :  { %v689_v39 = vpop.eup %688 }
 0x191   :  { %v127_v41 = vmul.f32 %v689_v39, %v850_v34 }
 0x193   :  { %v129_v45 = vsel %vm128_vm3, %v850_v34, %v127_v41 }
 0x194   :  { %v132_v52 = vsel %vm130_vm4, %v131_v47, %v129_v45 }
 0x195   :  { %v691_v42 = vpop.eup %690 }
 0x196   :  { %v134_v50 = vmul.f32 %v691_v42, %v853_v35 }
 0x198   :  { %v136_v60 = vsel %vm135_vm9, %v853_v35, %v134_v50 }
 0x199   :  { %v139_v7 = vsel %vm137_vm11, %v138_v1, %v136_v60 }
 0x1d3   :  { %v856_v36 = vpop.xlane.xlu0 %109  ;;  %v858_v37 = vpop.xlane.xlu1 %121 }
 0x1d4   :  { %692 = vrsqrt.f32 %v856_v36  ;;  %vm142_vm5 = vcmp.eq.f32.partialorder %v856_v36, inf  ;;  %v145_v48 = vand.u32 2147483648, %v856_v36  ;;  %vm144_vm6 = vcmp.eq.f32.partialorder %v856_v36, 0.0 }
 0x1d5   :  { %694 = vrsqrt.f32 %v858_v37  ;;  %vm156_vm7 = vcmp.eq.f32.partialorder %v858_v37, inf  ;;  %v159_v55 = vand.u32 2147483648, %v858_v37  ;;  %vm158_vm8 = vcmp.eq.f32.partialorder %v858_v37, 0.0 }
 0x1d6   :  { %v208_v29 = vmax.f32 %v856_v36, 1e-24  ;;  %v228_v32 = vmax.f32 %v858_v37, 1e-24 }
 0x1d7   :  { %v862_v38 = vpop.xlane.xlu0 %112 }
 0x1d8   :  { %696 = vrsqrt.f32 %v862_v38  ;;  %vm149_vm10 = vcmp.eq.f32.partialorder %v862_v38, inf  ;;  %v152_v62 = vand.u32 2147483648, %v862_v38  ;;  %vm151_vm12 = vcmp.eq.f32.partialorder %v862_v38, 0.0 }
 0x1d9   :  { %v209_v42 = vmax.f32 %v862_v38, 1e-24 }
 0x1db   :  { %v865_v40 = vpop.xlane.xlu0 %124 }
 0x1dc   :  { %698 = vrsqrt.f32 %v865_v40  ;;  %vm163_vm13 = vcmp.eq.f32.partialorder %v865_v40, inf  ;;  %v166_v8 = vand.u32 2147483648, %v865_v40  ;;  %vm165_vm14 = vcmp.eq.f32.partialorder %v865_v40, 0.0 }
 0x1e1   :  { %v693_v43 = vpop.eup %692 }
 0x1e2   :  { %v695_v44 = vpop.eup %694  ;;  %v141_v46 = vmul.f32 %v693_v43, %v856_v36  ;;  %v229_v43 = vmax.f32 %v865_v40, 1e-24 }
 0x1e3   :  { %v155_v49 = vmul.f32 %v695_v44, %v858_v37 }
 0x1e4   :  { %v143_v51 = vsel %vm142_vm5, %v856_v36, %v141_v46  ;;  %v248_v36 = vld [vmem:[%s1028_s2 + $0x10] sm:$0xff] }
 0x1e5   :  { %v146_v53 = vsel %vm144_vm6, %v145_v48, %v143_v51  ;;  %v157_v54 = vsel %vm156_vm7, %v858_v37, %v155_v49  ;;  %v697_v56 = vpop.eup %696  ;;  %v249_v37 = vld [vmem:[%s1028_s2 + $0x18] sm:$0xff] }
 0x1e6   :  { %v168_v57 = vmax.f32 %v132_v52, %v146_v53  ;;  %v160_v58 = vsel %vm158_vm8, %v159_v55, %v157_v54  ;;  %v148_v59 = vmul.f32 %v697_v56, %v862_v38  ;;  %v253_v45 = vpack.c.bf16 %v249_v37, %v248_v36 }
 0x1e8   :  { %v170_v61 = vmax.f32 %v168_v57, %v160_v58  ;;  %v150_v2 = vsel %vm149_vm10, %v862_v38, %v148_v59  ;;  %643 = vmatpush3.bf16.msra.mxu1 %v253_v45  ;;  %v246_v38 = vld [vmem:[%s1028_s2] sm:$0xff] }
 0x1e9   :  { %v699_v63 = vpop.eup %698  ;;  %v153_v5 = vsel %vm151_vm12, %v152_v62, %v150_v2  ;;  %644 = vmatprep.subr.bf16.mxu1 %v748_v0  ;;  %v326_v45 = vld [vmem:[%s1029_s3] sm:$0xff] }
 0x1ea   :  { %v172_v3 = vsub.f32 %v132_v52, %v170_v61  ;;  %v184_v4 = vsub.f32 %v160_v58, %v170_v61  ;;  %v162_v6 = vmul.f32 %v699_v63, %v865_v40  ;;  %v178_v9 = vsub.f32 %v146_v53, %v170_v61 }
 0x1eb   :  { %v169_v11 = vmax.f32 %v139_v7, %v153_v5 }
 0x1ec   :  { %v174_v10 = vmul.f32 1.442695, %v172_v3  ;;  %v164_v12 = vsel %vm163_vm13, %v865_v40, %v162_v6  ;;  %v180_v14 = vmul.f32 1.442695, %v178_v9  ;;  %v186_v15 = vmul.f32 1.442695, %v184_v4 }
 0x1ed   :  { %v167_v13 = vsel %vm165_vm14, %v166_v8, %v164_v12  ;;  %v247_v40 = vld [vmem:[%s1028_s2 + $0x8] sm:$0xff]  ;;  %v198_v4 = vmax.f32 %v850_v34, 1e-24 }
 0x1ee   :  { %700 = vpow2.f32 %v174_v10  ;;  %v171_v16 = vmax.f32 %v169_v11, %v167_v13  ;;  %v252_v50 = vpack.c.bf16 %v247_v40, %v246_v38 }
 0x1ef   :  { %702 = vpow2.f32 %v180_v14 }
 0x1f0   :  { %v173_v17 = vsub.f32 %v139_v7, %v171_v16  ;;  %v185_v18 = vsub.f32 %v167_v13, %v171_v16  ;;  %v179_v20 = vsub.f32 %v153_v5, %v171_v16  ;;  %704 = vpow2.f32 %v186_v15  ;;  %645 = vmatpush3.bf16.msra.mxu1 %v252_v50 }
 0x1f1   :  { %650 = vmatprep.subr.bf16.mxu1 %v748_v0  ;;  %v199_v5 = vmax.f32 %v853_v35, 1e-24  ;;  %v332_v35 = vld [vmem:[%s1029_s3 + $0x30] sm:$0xff] }
 0x1f2   :  { %v176_v21 = vmul.f32 1.442695, %v173_v17  ;;  %v182_v22 = vmul.f32 1.442695, %v179_v20  ;;  %v188_v24 = vmul.f32 1.442695, %v185_v18 }
 0x1f4   :  { %706 = vpow2.f32 %v176_v21 }
 0x1f5   :  { %708 = vpow2.f32 %v182_v22  ;;  %v331_v22 = vld [vmem:[%s1029_s3 + $0x28] sm:$0xff] }
 0x1f6   :  { %710 = vpow2.f32 %v188_v24 }
 0x1fb   :  { %v701_v25 = vpop.eup %700 }
 0x1fc   :  { %v703_v26 = vpop.eup %702 }
 0x1fd   :  { %v190_v27 = vadd.f32 %v703_v26, %v701_v25  ;;  %v705_v28 = vpop.eup %704 }
 0x1ff   :  { %v192_v30 = vadd.f32 %v705_v28, %v190_v27 }
 0x201   :  { %v707_v31 = vpop.eup %706  ;;  %712 = vrcp.f32 %v192_v30 }
 0x202   :  { %v709_v33 = vpop.eup %708  ;;  %714 = vrcp.f32 %v208_v29 }
 0x203   :  { %v191_v39 = vadd.f32 %v709_v33, %v707_v31  ;;  %v711_v41 = vpop.eup %710  ;;  %716 = vrcp.f32 %v228_v32 }
 0x205   :  { %v193_v44 = vadd.f32 %v711_v41, %v191_v39 }
 0x207   :  { %718 = vrcp.f32 %v193_v44  ;;  %v329_v44 = vld [vmem:[%s1029_s3 + $0x18] sm:$0xff] }
 0x208   :  { %720 = vrcp.f32 %v209_v42 }
 0x209   :  { %722 = vrcp.f32 %v229_v43  ;;  %v328_v43 = vld [vmem:[%s1029_s3 + $0x10] sm:$0xff] }
 0x20a   :  { %724 = vrcp.f32 %v198_v4  ;;  %v337_v37 = vpack.c.bf16 %v329_v44, %v328_v43 }
 0x20b   :  { %726 = vrcp.f32 %v199_v5 }
 0x20e   :  { %v713_v46 = vpop.eup %712 }
 0x20f   :  { %v206_v47 = vmul.f32 %v713_v46, %v703_v26  ;;  %v226_v48 = vmul.f32 %v713_v46, %v705_v28  ;;  %v196_v49 = vmul.f32 %v713_v46, %v701_v25  ;;  %v715_v51 = vpop.eup %714  ;;  %v601_v25 = vld [vmem:[%s1028_s2 + $0x20] ss:$0 sm:$0xff]  ;;  %v327_v46 = vld [vmem:[%s1029_s3 + $0x8] sm:$0xff] }
 0x210   :  { %v717_v53 = vpop.eup %716  ;;  %v336_v38 = vpack.c.bf16 %v327_v46, %v326_v45 }
 0x211   :  { %v212_v52 = vmul.f32 %v715_v51, %v206_v47  ;;  %v232_v55 = vmul.f32 %v717_v53, %v226_v48 }
 0x213   :  { %v214_v54 = vmul.f32 %v212_v52, %v830_v19  ;;  %v234_v62 = vmul.f32 %v232_v55, %v830_v19  ;;  %v391_v55 = vld [vmem:[%s1030_s4 + $0x10] sm:$0xff] }
 0x214   :  { %v719_v56 = vpop.eup %718 }
 0x215   :  { %v721_v57 = vpop.eup %720  ;;  %218 = vrot.lane.b32.xlu1 %v214_v54, %s751_s19  ;;  %v207_v58 = vmul.f32 %v719_v56, %v709_v33  ;;  %v227_v59 = vmul.f32 %v719_v56, %v711_v41  ;;  %v197_v60 = vmul.f32 %v719_v56, %v707_v31  ;;  %v392_v56 = vld [vmem:[%s1030_s4 + $0x18] sm:$0xff] }
 0x216   :  { %v723_v61 = vpop.eup %722 }
 0x217   :  { %v213_v63 = vmul.f32 %v721_v57, %v207_v58  ;;  %v233_v1 = vmul.f32 %v723_v61, %v227_v59  ;;  %v725_v6 = vpop.eup %724  ;;  %v395_v57 = vpack.c.bf16 %v392_v56, %v391_v55  ;;  %v389_v58 = vld [vmem:[%s1030_s4] sm:$0xff]  ;;  %v390_v59 = vld [vmem:[%s1030_s4 + $0x8] sm:$0xff] }
 0x218   :  { %v727_v7 = vpop.eup %726  ;;  %v202_v9 = vmul.f32 %v725_v6, %v196_v49  ;;  %v454_v6 = vld [vmem:[%s1031_s5 + $0x10] sm:$0xff] }
 0x219   :  { %238 = vrot.lane.b32.xlu1 %v234_v62, %s750_s0  ;;  %v215_v2 = vmul.f32 %v213_v63, %v836_v23  ;;  %v235_v3 = vmul.f32 %v233_v1, %v836_v23  ;;  %v203_v10 = vmul.f32 %v727_v7, %v197_v60  ;;  %663 = vmatpush3.bf16.msra.mxu0 %v395_v57  ;;  %v605_v62 = vld [vmem:[%s1029_s3 + $0x40] ss:$0 sm:$0xff]  ;;  %v455_v7 = vld [vmem:[%s1031_s5 + $0x18] sm:$0xff] }
 0x21a   :  { %v204_v12 = vmul.f32 %v202_v9, %v830_v19  ;;  %v333_v19 = vld [vmem:[%s1029_s3 + $0x38] sm:$0xff]  ;;  %664 = vmatprep.subr.bf16.mxu0 %v748_v0  ;;  %v394_v60 = vpack.c.bf16 %v390_v59, %v389_v58  ;;  %v452_v9 = vld [vmem:[%s1031_s5] sm:$0xff] }
 0x21b   :  { %220 = vrot.lane.b32.xlu0 %v215_v2, %s751_s19  ;;  %v205_v13 = vmul.f32 %v203_v10, %v836_v23  ;;  %v330_v23 = vld [vmem:[%s1029_s3 + $0x20] sm:$0xff]  ;;  %v339_v21 = vpack.c.bf16 %v333_v19, %v332_v35  ;;  %v453_v10 = vld [vmem:[%s1031_s5 + $0x8] sm:$0xff] }
 0x21c   :  { %v338_v24 = vpack.c.bf16 %v331_v22, %v330_v23  ;;  %v510_v19 = vld [vmem:[%s1032_s6] sm:$0xff]  ;;  %v511_v23 = vld [vmem:[%s1032_s6 + $0x8] sm:$0xff] }
 0x21d   :  { %240 = vrot.lane.b32.xlu1 %v235_v3, %s750_s0  ;;  %665 = vmatpush3.bf16.msra.mxu0 %v394_v60  ;;  %v608_v22 = vld [vmem:[%s1031_s5 + $0x20] ss:$0 sm:$0xff] }
 0x21e   :  { %670 = vmatprep.subr.bf16.mxu0 %v748_v0 }
 0x287   :  { %v219_v8 = vpop.permute.xlu1 %218 }
 0x288   :  { %v224_v15 = vadd.f32 %v219_v8, %v204_v12  ;;  %v458_v8 = vpack.c.bf16 %v455_v7, %v454_v6 }
 0x28b   :  { %v239_v11 = vpop.permute.xlu1 %238 }
 0x28c   :  { %v244_v18 = vadd.f32 %v239_v11, %v224_v15  ;;  %v457_v11 = vpack.c.bf16 %v453_v10, %v452_v9 }
 0x28d   :  { %v221_v14 = vpop.permute.xlu0 %220 }
 0x28e   :  { %v225_v16 = vadd.f32 %v221_v14, %v205_v13 }
 0x28f   :  { %v241_v17 = vpop.permute.xlu1 %240 }
 0x290   :  { %v245_v34 = vadd.f32 %v241_v17, %v225_v16 }
 0x292   :  { %v251_v20 = vpack.c.bf16 %v245_v34, %v244_v18 }
 0x294   :  { %647 = vmatmul.mubr.msk.bf16.vlgmr.msra.gmra.mxu1 %vm93_vm2, %v251_v20 }
 0x295   :  { %658 = vmatprep.mubr.msk.bf16.mxu1 %vm749_vm0, %v748_v0  ;;  %651 = vmatpush3.bf16.msra.mxu1 %v339_v21  ;;  %v513_v21 = vpack.c.bf16 %v511_v23, %v510_v19 }
 0x296   :  { %652 = vmatprep.subr.bf16.mxu1 %v748_v0 }
 0x299   :  { %653 = vmatpush3.bf16.msra.mxu1 %v338_v24 }
 0x29a   :  { %654 = vmatprep.subr.bf16.mxu1 %v748_v0 }
 0x29d   :  { %655 = vmatpush3.bf16.msra.mxu1 %v337_v37 }
 0x29e   :  { %656 = vmatprep.subr.bf16.mxu1 %v748_v0 }
 0x2a1   :  { %657 = vmatpush3.bf16.msra.mxu1 %v336_v38 }
 0x2a2   :  { %678 = vmatprep.subr.bf16.mxu1 %v748_v0 }
 0x354   :  { %v295_v26 = vpop.f32.mrf.mxu1 }
 0x355   :  { %v296_v27 = vadd.f32 %v601_v25, %v295_v26 }
 0x356   :  { %v648_v28 = vpop.f32.mrf.mxu1 }
 0x357   :  { %v603_v29 = vmul.f32 -1.442695, %v296_v27 }
 0x358   :  { %v298_v30 = vpop.f32.mrf.mxu1 }
 0x359   :  { %728 = vpow2.f32 %v603_v29  ;;  %v299_v31 = vadd.f32 %v601_v25, %v298_v30 }
 0x35a   :  { %v649_v32 = vpop.f32.mrf.mxu1 }
 0x35b   :  { %v604_v33 = vmul.f32 -1.442695, %v299_v31 }
 0x35d   :  { %730 = vpow2.f32 %v604_v33  ;;  %v610_v33 = vld [vmem:[%s1032_s6 + $0x10] ss:$0 sm:$0xff] }
 0x366   :  { %v729_v39 = vpop.eup %728 }
 0x367   :  { %v308_v41 = vadd.f32 1.0, %v729_v39 }
 0x369   :  { %732 = vrcp.f32 %v308_v41 }
 0x36a   :  { %v731_v42 = vpop.eup %730 }
 0x36b   :  { %v309_v36 = vadd.f32 1.0, %v731_v42 }
 0x36d   :  { %734 = vrcp.f32 %v309_v36 }
 0x376   :  { %v733_v40 = vpop.eup %732 }
 0x377   :  { %v314_v47 = vmul.f32 %v733_v40, %v296_v27 }
 0x379   :  { %318 = vrot.lane.b32.xlu0 %v314_v47, %s750_s0 }
 0x37a   :  { %v735_v48 = vpop.eup %734 }
 0x37b   :  { %v315_v49 = vmul.f32 %v735_v48, %v299_v31 }
 0x37d   :  { %320 = vrot.lane.b32.xlu1 %v315_v49, %s750_s0 }
 0x3eb   :  { %v319_v50 = vpop.permute.xlu0 %318 }
 0x3ec   :  { %v324_v52 = vmul.f32 %v319_v50, %v314_v47 }
 0x3ef   :  { %v321_v51 = vpop.permute.xlu1 %320 }
 0x3f0   :  { %v325_v53 = vmul.f32 %v321_v51, %v315_v49 }
 0x3f2   :  { %v335_v54 = vpack.c.bf16 %v325_v53, %v324_v52 }
 0x3f4   :  { %659 = vmatmul.mubr.msk.bf16.vlgmr.msra.gmra.mxu1 %vm344_vm15, %v335_v54 }
 0x3f5   :  { %680 = vmatprep.mubr.msk.bf16.mxu1 %vm749_vm0, %v748_v0  ;;  %679 = vmatpush3.bf16.msra.mxu1 %v513_v21 }
 0x4b4   :  { %v382_v61 = vpop.f32.mrf.mxu1 }
 0x4b5   :  { %v383_v2 = vadd.f32 %v605_v62, %v382_v61 }
 0x4b6   :  { %v660_v63 = vpop.f32.mrf.mxu1 }
 0x4b8   :  { %v385_v1 = vpop.f32.mrf.mxu1 }
 0x4b9   :  { %v386_v3 = vadd.f32 %v605_v62, %v385_v1 }
 0x4ba   :  { %v661_v4 = vpop.f32.mrf.mxu1 }
 0x4bb   :  { %v393_v5 = vpack.c.bf16 %v386_v3, %v383_v2 }
 0x4bd   :  { %667 = vmatmul.mubr.msk.bf16.vlgmr.msra.gmra.mxu0 %vm93_vm2, %v393_v5 }
 0x4be   :  { %674 = vmatprep.mubr.msk.bf16.mxu0 %vm749_vm0, %v748_v0  ;;  %671 = vmatpush3.bf16.msra.mxu0 %v458_v8  ;;  %vm519_vm0 = vcmask 130048  }
 0x4bf   :  { %672 = vmatprep.subr.bf16.mxu0 %v748_v0 }
 0x4c2   :  { %673 = vmatpush3.bf16.msra.mxu0 %v457_v11 }
 0x57d   :  { %v433_v12 = vpop.f32.mrf.mxu0 }
 0x57e   :  { %v440_v13 = vmul.f32 %v433_v12, %v433_v12 }
 0x57f   :  { %v668_v14 = vpop.f32.mrf.mxu0 }
 0x580   :  { %444 = vrot.lane.b32.xlu0 %v440_v13, %s751_s19 }
 0x581   :  { %v436_v15 = vpop.f32.mrf.mxu0 }
 0x582   :  { %v441_v16 = vmul.f32 %v436_v15, %v436_v15 }
 0x583   :  { %v669_v17 = vpop.f32.mrf.mxu0 }
 0x584   :  { %446 = vrot.lane.b32.xlu1 %v441_v16, %s751_s19 }
 0x5f2   :  { %v445_v0 = vpop.permute.xlu0 %444 }
 0x5f3   :  { %v450_v34 = vadd.f32 %v445_v0, %v440_v13 }
 0x5f6   :  { %v447_v18 = vpop.permute.xlu1 %446 }
 0x5f7   :  { %v451_v20 = vadd.f32 %v447_v18, %v441_v16 }
 0x5f9   :  { %v456_v35 = vpack.c.bf16 %v451_v20, %v450_v34 }
 0x5fb   :  { %675 = vmatmul.mubr.msk.bf16.vlgmr.msra.gmra.mxu0 %vm93_vm2, %v456_v35 }
 0x6bb   :  { %v501_v24 = vpop.f32.mrf.mxu0 }
 0x6bc   :  { %v502_v26 = vadd.f32 %v608_v22, %v501_v24 }
 0x6bd   :  { %v676_v25 = vpop.f32.mrf.mxu0 }
 0x6be   :  { %v508_v30 = vmax.f32 %v502_v26, 0.0 }
 0x6bf   :  { %v504_v27 = vpop.f32.mrf.mxu0 }
 0x6c0   :  { %v505_v28 = vadd.f32 %v608_v22, %v504_v27 }
 0x6c1   :  { %v677_v29 = vpop.f32.mrf.mxu0 }
 0x6c2   :  { %v509_v31 = vmax.f32 %v505_v28, 0.0 }
 0x6c4   :  { %v512_v32 = vpack.c.bf16 %v509_v31, %v508_v30 }
 0x6c6   :  { %681 = vmatmul.mubr.msk.bf16.vlgmr.msra.gmra.mxu1 %vm519_vm0, %v512_v32 }
 0x786   :  { %v557_v39 = vpop.f32.mrf.mxu1 }
 0x787   :  { %v558_v41 = vadd.f32 %v610_v33, %v557_v39 }
 0x788   :  { %v682_v42 = vpop.f32.mrf.mxu1 }
 0x789   :  { %736 = vtanh.f32 %v558_v41 }
 0x78a   :  { %v560_v43 = vpop.f32.mrf.mxu1 }
 0x78b   :  { %v561_v44 = vadd.f32 %v610_v33, %v560_v43 }
 0x78c   :  { %v683_v36 = vpop.f32.mrf.mxu1 }
 0x78d   :  { %738 = vtanh.f32 %v561_v44 }
 0x796   :  { %v737_v37 = vpop.eup %736 }
 0x797   :  { %v567_v45 = vsel %vm566_vm1, %v737_v37, -inf }
 0x798   :  { %568 = vmax.xlane.f32.xlu0 %v567_v45 }
 0x79a   :  { %v739_v46 = vpop.eup %738 }
 0x79b   :  { %v570_v38 = vsel %vm566_vm1, %v739_v46, -inf }
 0x79c   :  { %571 = vmax.xlane.f32.xlu1 %v570_v38 }
 0x821   :  { %v569_v40 = vpop.xlane.xlu0 %568 }
 0x822   :  { %v573_v47 = vsub.f32 %v737_v37, %v569_v40 }
 0x824   :  { %v575_v48 = vmul.f32 1.442695, %v573_v47 }
 0x825   :  { %v572_v49 = vpop.xlane.xlu1 %571 }
 0x826   :  { %740 = vpow2.f32 %v575_v48  ;;  %v574_v50 = vsub.f32 %v739_v46, %v572_v49 }
 0x828   :  { %v577_v51 = vmul.f32 1.442695, %v574_v50 }
 0x82a   :  { %742 = vpow2.f32 %v577_v51 }
 0x833   :  { %v741_v52 = vpop.eup %740 }
 0x834   :  { %v579_v53 = vsel %vm566_vm1, %v741_v52, 0.0 }
 0x835   :  { %580 = vadd.xlane.f32.xlu0 %v579_v53 }
 0x837   :  { %v743_v54 = vpop.eup %742 }
 0x838   :  { %v582_v55 = vsel %vm566_vm1, %v743_v54, 0.0 }
 0x839   :  { %583 = vadd.xlane.f32.xlu0 %v582_v55 }
 0x8be   :  { %v581_v56 = vpop.xlane.xlu0 %580 }
 0x8bf   :  { %744 = vlog2.f32 %v581_v56 }
 0x8c2   :  { %v584_v57 = vpop.xlane.xlu0 %583 }
 0x8c3   :  { %746 = vlog2.f32 %v584_v57 }
 0x8cc   :  { %v745_v58 = vpop.eup %744 }
 0x8cd   :  { %v586_v59 = vmul.f32 0.6931472, %v745_v58 }
 0x8cf   :  { %v589_v60 = vadd.f32 %v586_v59, %v569_v40 }
 0x8d0   :  { %v747_v61 = vpop.eup %746 }
 0x8d1   :  { %v591_v62 = vsub.f32 %v737_v37, %v589_v60  ;;  %v588_v63 = vmul.f32 0.6931472, %v747_v61 }
 0x8d3   :  { %593 = vst.msk [vmem:[%s1033_s7] sm:$0xff] %vm566_vm1, %v591_v62  ;;  %v590_v1 = vadd.f32 %v588_v63, %v572_v49 }
 0x8d5   :  { %v592_v2 = vsub.f32 %v739_v46, %v590_v1 }
 0x8d7   :  { %594 = vst.msk [vmem:[%s1033_s7 + $0x8] sm:$0xff] %vm566_vm1, %v592_v2 }

</bundles_post_ra>
